<compile_context>
chip_gen: v6e
topology: v6e:2x2x1
jax: 0.10.0
libtpu: 0.0.40
codegen_flags: <defaults>
</compile_context>

<pallas_src>
import functools
import math

import jax
import jax.numpy as jnp
from jax.experimental import pallas as pl
from jax.experimental.pallas import tpu as pltpu


def _cdiv(a, b):
    return -(-a // b)


def _vmem_capacity_bytes():
    """Per-TensorCore VMEM capacity; conservative (v7x-sized) fallback."""
    try:
        cap = int(getattr(pltpu.get_tpu_info(), "vmem_capacity_bytes", 0))
        if cap > 0:
            return cap
    except Exception:
        pass
    return 64 * 1024 * 1024


def _ddice_partial_kernel(p_ref, q_ref, l_ref,
                          inter_ref, insum_ref, tgtsum_ref, *,
                          f_valid, tile, acc_w, nchunks, n_red,
                          needs_mask, tail_block, tail_clean, tail_hi):
    """One grid step: add this block's lane-wide partial sums into the outputs."""
    j = pl.program_id(1)

    @pl.when(j == 0)
    def _():
        inter_ref[...] = jnp.zeros_like(inter_ref)
        insum_ref[...] = jnp.zeros_like(insum_ref)
        tgtsum_ref[...] = jnp.zeros_like(tgtsum_ref)

    rows = inter_ref.shape[0]

    def one_minus_sigmoid(x):
        # 1 - sigmoid(x) == 0.5 - 0.5*tanh(0.5*x): a single EUP push/element.
        return 0.5 - 0.5 * jnp.tanh(0.5 * x)

    def make_chunk_body(masked, block_start):
        def body(k, carry):
            ip, isum, tsum = carry
            lo = k * acc_w
            if not isinstance(lo, int) and acc_w % 128 == 0:
                lo = pl.multiple_of(lo, 128)
            sl = pl.ds(lo, acc_w)
            # Chunked reads straight from the refs: no full-tile intermediates.
            l = l_ref[:, sl].astype(jnp.float32)
            inp = one_minus_sigmoid(p_ref[:, sl].astype(jnp.float32)) * l
            tgt = one_minus_sigmoid(q_ref[:, sl].astype(jnp.float32)) * l
            if masked:
                # Must be a select (not a multiply): padded lanes may hold
                # garbage/NaN from the clamped edge DMA and NaN*0 == NaN.
                lane = jax.lax.broadcasted_iota(jnp.int32, (rows, acc_w), 1)
                valid = (block_start + k * acc_w + lane) < f_valid
                zero = jnp.zeros_like(inp)
                inp = jnp.where(valid, inp, zero)
                tgt = jnp.where(valid, tgt, zero)
            return (ip + inp * tgt, isum + inp, tsum + tgt)
        return body

    def run_chunks(lo_k, hi_k, masked, block_start, carry):
        if hi_k - lo_k <= 0:
            return carry
        body = make_chunk_body(masked, block_start)
        if hi_k - lo_k <= 8:           # short loops: keep fully visible
            for k in range(lo_k, hi_k):
                carry = body(k, carry)
            return carry
        return jax.lax.fori_loop(lo_k, hi_k, body, carry)

    def accumulate(carry):
        ip, isum, tsum = carry
        inter_ref[...] += ip
        insum_ref[...] += isum
        tgtsum_ref[...] += tsum

    zeros = jnp.zeros((rows, acc_w), jnp.float32)
    init = (zeros, zeros, zeros)

    if not needs_mask:
        accumulate(run_chunks(0, nchunks, False, 0, init))
    else:
        block_idx = pl.program_id(0) * n_red + j

        @pl.when(block_idx < tail_block)       # full blocks: unmasked fast path
        def _():
            accumulate(run_chunks(0, nchunks, False, 0, init))

        @pl.when(block_idx == tail_block)      # ragged tail block only
        def _():
            tail_start = tail_block * tile     # static
            carry = run_chunks(0, tail_clean, False, 0, init)
            carry = run_chunks(tail_clean, tail_hi, True, tail_start, carry)
            accumulate(carry)
        # Blocks past tail_block (duplicated, fully padded) are skipped entirely.


@jax.jit
def ddice(P, Q, L):
    """Pallas implementation of DDice.forward(P, Q, L)."""
    smooth = jnp.float32(1e-05)
    n = P.shape[0]
    f = math.prod(P.shape[1:])
    itemsize = max(P.dtype.itemsize, Q.dtype.itemsize, L.dtype.itemsize)

    # ---- sublane packing: view each sample as `s` rows of f/s features ------
    # f32 vregs hold 8 sublanes, bf16 16, int8 32: pack small batches to fill.
    target_rows = max(8, 32 // itemsize)
    s = 1
    if n < target_rows:
        for cand in range(target_rows // n, 0, -1):
            if f % cand == 0:
                s = cand
                break
    # (n >= 8 with n % 8 != 0 is left unpacked: correct, slightly lower density.)
    r = n * s
    f2 = f // s
    p2 = P.reshape(r, f2)
    q2 = Q.reshape(r, f2)
    l2 = L.reshape(r, f2)

    # ---- generation-aware VMEM budget & byte-targeted block sizing ----------
    vmem_cap = _vmem_capacity_bytes()
    dbuf_budget = min(int(vmem_cap * 0.4), 48 * 1024 * 1024)   # 3 inputs x 2 bufs
    block_bytes_cap = min(4 * 1024 * 1024,
                          max(r * 128 * itemsize, dbuf_budget // 6))
    vmem_limit = max(32 * 1024 * 1024,
                     min(int(vmem_cap * 0.75), 96 * 1024 * 1024))

    pref_acc = 512 if r <= 8 else (256 if r <= 16 else 128)

    if f2 <= pref_acc or f2 < 256:
        # Tiny feature dim: one step, one chunk, no masking.
        n_par, n_red = 1, 1
        acc_w, nchunks, tile = f2, 1, f2
        needs_mask = False
    else:
        acc_w = min(pref_acc, (f2 // 128) * 128)
        chunks_total = _cdiv(f2, acc_w)
        max_cps = max(1, block_bytes_cap // (r * acc_w * itemsize))
        small = (r * f2 * itemsize) <= (512 * 1024)
        if small:
            # Not worth pipelining; still chunk inside the kernel.
            n_par, n_red = 1, 1
            nchunks = chunks_total
        else:
            n_par = 2                                   # shards v7x's 2 TCs
            n_red = max(2, _cdiv(chunks_total, n_par * max_cps))
            n_red = max(1, min(n_red, chunks_total // n_par))
            nchunks = _cdiv(chunks_total, n_par * n_red)
        tile = nchunks * acc_w
        needs_mask = (n_par * n_red * tile != f2)

    # Static ragged-tail bookkeeping (only used when needs_mask).
    tail_block = f2 // tile
    tail_rem = f2 - tail_block * tile
    tail_clean = tail_rem // acc_w
    tail_hi = _cdiv(tail_rem, acc_w)
    last_block = (f2 - 1) // tile

    def in_map(c, j):
        # Clamp keeps any (pathological) overshooting block index in-bounds;
        # such blocks are skipped by the kernel's tail gating.
        return (0, jnp.minimum(c * n_red + j, last_block))

    in_spec = pl.BlockSpec((r, tile), in_map)
    out_spec = pl.BlockSpec((None, r, acc_w), lambda c, j: (c, 0, 0))
    out_sds = jax.ShapeDtypeStruct((n_par, r, acc_w), jnp.float32)

    kernel = functools.partial(
        _ddice_partial_kernel,
        f_valid=f2, tile=tile, acc_w=acc_w, nchunks=nchunks, n_red=n_red,
        needs_mask=needs_mask, tail_block=tail_block, tail_clean=tail_clean,
        tail_hi=tail_hi)

    inter_p, in_p, tgt_p = pl.pallas_call(
        kernel,
        out_shape=(out_sds, out_sds, out_sds),
        grid_spec=pltpu.PrefetchScalarGridSpec(
            num_scalar_prefetch=0,
            grid=(n_par, n_red),
            in_specs=[in_spec, in_spec, in_spec],
            out_specs=[out_spec, out_spec, out_spec],
        ),
        compiler_params=pltpu.CompilerParams(
            dimension_semantics=("parallel", "arbitrary"),
            vmem_limit_bytes=int(vmem_limit),
        ),
    )(p2, q2, l2)

    # Tiny finalize in plain JAX: fold chunks, lanes, and packed sub-rows.
    def fold(x):
        v = jnp.sum(x, axis=(0, 2))               # (r,)
        return jnp.sum(v.reshape(n, s), axis=1)   # (n,)

    inter = fold(inter_p)
    insum = fold(in_p)
    tgtsum = fold(tgt_p)
    dice = (2.0 * inter + smooth) / (insum + tgtsum + smooth)
    return jnp.sum(dice) / n


def _ddice_ref(P, Q, L):
    smooth = 1e-05
    n = P.shape[0]
    inp = ((1.0 - jax.nn.sigmoid(P)) * L).reshape(n, -1)
    tgt = ((1.0 - jax.nn.sigmoid(Q)) * L).reshape(n, -1)
    inter = jnp.sum(inp * tgt, axis=1)
    dice = (2.0 * inter + smooth) / (
        jnp.sum(inp, axis=1) + jnp.sum(tgt, axis=1) + smooth)
    return jnp.sum(dice) / n


if __name__ == "__main__":
    key = jax.random.PRNGKey(0)
    configs = [
        ((2, 4, 16, 16), jnp.float32),    # tiny single-block path
        ((2, 1, 23, 29), jnp.float32),    # ragged feature tail -> masked chunk
        ((2, 4, 16, 16), jnp.bfloat16),   # sub-32-bit sublane packing (s=16)
        ((2, 5, 129, 128), jnp.float32),  # multi-step grid, 2-way split, ragged tile
    ]
    for shape, dtype in configs:
        key, kp, kq, kl = jax.random.split(key, 4)
        P = jax.random.normal(kp, shape, dtype=jnp.float32).astype(dtype)
        Q = jax.random.normal(kq, shape, dtype=jnp.float32).astype(dtype)
        # L is a binary-ish label mask, as in typical dice-loss usage.
        L = (jax.random.uniform(kl, shape) > 0.5).astype(dtype)

        out = jax.block_until_ready(ddice(P, Q, L))
        ref = _ddice_ref(P.astype(jnp.float32), Q.astype(jnp.float32),
                         L.astype(jnp.float32))
        assert jnp.allclose(out, ref, rtol=1e-4, atol=1e-5), (shape, dtype, out, ref)
    print("KERNEL_OK")
</pallas_src>

<mosaic_0001>
module attributes {stable_mosaic.version = 11 : i64} {
  func.func @_ddice_partial_kernel(%arg0: i32, %arg1: i32, %arg2: memref<8x256xf32, #tpu.memory_space<vmem>>, %arg3: memref<8x256xf32, #tpu.memory_space<vmem>>, %arg4: memref<8x256xf32, #tpu.memory_space<vmem>>, %arg5: memref<1x8x256xf32, #tpu.memory_space<vmem>>, %arg6: memref<1x8x256xf32, #tpu.memory_space<vmem>>, %arg7: memref<1x8x256xf32, #tpu.memory_space<vmem>>) attributes {dimension_semantics = [#tpu.dimension_semantics<parallel>, #tpu.dimension_semantics<arbitrary>], iteration_bounds = array<i64: 1, 1>, scalar_prefetch = 0 : i64, scratch_operands = 0 : i64, tpu.core_type = #tpu.core_type<tc>, window_params = [{transform_indices = @transform_0, window_bounds = array<i64: 8, 256>}, {transform_indices = @transform_1, window_bounds = array<i64: 8, 256>}, {transform_indices = @transform_2, window_bounds = array<i64: 8, 256>}, {transform_indices = @transform_3, window_bounds = array<i64: 1, 8, 256>}, {transform_indices = @transform_4, window_bounds = array<i64: 1, 8, 256>}, {transform_indices = @transform_5, window_bounds = array<i64: 1, 8, 256>}]} {
    %c0_i32 = arith.constant 0 : i32
    %0 = arith.cmpi eq, %arg1, %c0_i32 : i32
    %1 = arith.extui %0 : i1 to i32
    %c0_i32_0 = arith.constant 0 : i32
    %2 = arith.cmpi ne, %1, %c0_i32_0 : i32
    scf.if %2 {
      %cst_30 = arith.constant 0.000000e+00 : f32
      %45 = vector.broadcast %cst_30 : f32 to vector<8x256xf32>
      %c0_31 = arith.constant 0 : index
      %c0_32 = arith.constant 0 : index
      %c0_33 = arith.constant 0 : index
      %46 = vector.load %arg5[%c0_31, %c0_32, %c0_33] : memref<1x8x256xf32, #tpu.memory_space<vmem>>, vector<1x8x256xf32>
      %47 = vector.shape_cast %46 : vector<1x8x256xf32> to vector<8x256xf32>
      %48 = vector.shape_cast %45 : vector<8x256xf32> to vector<1x8x256xf32>
      tpu.vector_store %arg5[%c0_31, %c0_32, %c0_33], %48 {strides = array<i32>} : memref<1x8x256xf32, #tpu.memory_space<vmem>>, vector<1x8x256xf32>,
      %cst_34 = arith.constant 0.000000e+00 : f32
      %49 = vector.broadcast %cst_34 : f32 to vector<8x256xf32>
      %c0_35 = arith.constant 0 : index
      %c0_36 = arith.constant 0 : index
      %c0_37 = arith.constant 0 : index
      %50 = vector.load %arg6[%c0_35, %c0_36, %c0_37] : memref<1x8x256xf32, #tpu.memory_space<vmem>>, vector<1x8x256xf32>
      %51 = vector.shape_cast %50 : vector<1x8x256xf32> to vector<8x256xf32>
      %52 = vector.shape_cast %49 : vector<8x256xf32> to vector<1x8x256xf32>
      tpu.vector_store %arg6[%c0_35, %c0_36, %c0_37], %52 {strides = array<i32>} : memref<1x8x256xf32, #tpu.memory_space<vmem>>, vector<1x8x256xf32>,
      %cst_38 = arith.constant 0.000000e+00 : f32
      %53 = vector.broadcast %cst_38 : f32 to vector<8x256xf32>
      %c0_39 = arith.constant 0 : index
      %c0_40 = arith.constant 0 : index
      %c0_41 = arith.constant 0 : index
      %54 = vector.load %arg7[%c0_39, %c0_40, %c0_41] : memref<1x8x256xf32, #tpu.memory_space<vmem>>, vector<1x8x256xf32>
      %55 = vector.shape_cast %54 : vector<1x8x256xf32> to vector<8x256xf32>
      %56 = vector.shape_cast %53 : vector<8x256xf32> to vector<1x8x256xf32>
      tpu.vector_store %arg7[%c0_39, %c0_40, %c0_41], %56 {strides = array<i32>} : memref<1x8x256xf32, #tpu.memory_space<vmem>>, vector<1x8x256xf32>,
    } else {
    }
    %cst = arith.constant 0.000000e+00 : f32
    %3 = vector.broadcast %cst : f32 to vector<8x256xf32>
    %c0 = arith.constant 0 : index
    %c0_1 = arith.constant 0 : index
    %4 = vector.load %arg4[%c0, %c0_1] : memref<8x256xf32, #tpu.memory_space<vmem>>, vector<8x256xf32>
    %c0_2 = arith.constant 0 : index
    %c0_3 = arith.constant 0 : index
    %5 = vector.load %arg2[%c0_2, %c0_3] : memref<8x256xf32, #tpu.memory_space<vmem>>, vector<8x256xf32>
    %cst_4 = arith.constant 5.000000e-01 : f32
    %6 = vector.broadcast %cst_4 : f32 to vector<8x256xf32>
    %7 = arith.mulf %6, %5 : vector<8x256xf32>
    %8 = math.tanh %7 : vector<8x256xf32>
    %cst_5 = arith.constant 5.000000e-01 : f32
    %9 = vector.broadcast %cst_5 : f32 to vector<8x256xf32>
    %10 = arith.mulf %9, %8 : vector<8x256xf32>
    %cst_6 = arith.constant 5.000000e-01 : f32
    %11 = vector.broadcast %cst_6 : f32 to vector<8x256xf32>
    %12 = arith.subf %11, %10 : vector<8x256xf32>
    %13 = arith.mulf %12, %4 : vector<8x256xf32>
    %c0_7 = arith.constant 0 : index
    %c0_8 = arith.constant 0 : index
    %14 = vector.load %arg3[%c0_7, %c0_8] : memref<8x256xf32, #tpu.memory_space<vmem>>, vector<8x256xf32>
    %cst_9 = arith.constant 5.000000e-01 : f32
    %15 = vector.broadcast %cst_9 : f32 to vector<8x256xf32>
    %16 = arith.mulf %15, %14 : vector<8x256xf32>
    %17 = math.tanh %16 : vector<8x256xf32>
    %cst_10 = arith.constant 5.000000e-01 : f32
    %18 = vector.broadcast %cst_10 : f32 to vector<8x256xf32>
    %19 = arith.mulf %18, %17 : vector<8x256xf32>
    %cst_11 = arith.constant 5.000000e-01 : f32
    %20 = vector.broadcast %cst_11 : f32 to vector<8x256xf32>
    %21 = arith.subf %20, %19 : vector<8x256xf32>
    %22 = arith.mulf %21, %4 : vector<8x256xf32>
    %23 = arith.mulf %13, %22 : vector<8x256xf32>
    %24 = arith.addf %3, %23 : vector<8x256xf32>
    %25 = arith.addf %3, %13 : vector<8x256xf32>
    %26 = arith.addf %3, %22 : vector<8x256xf32>
    %c0_12 = arith.constant 0 : index
    %c0_13 = arith.constant 0 : index
    %c0_14 = arith.constant 0 : index
    %27 = vector.load %arg5[%c0_12, %c0_13, %c0_14] : memref<1x8x256xf32, #tpu.memory_space<vmem>>, vector<1x8x256xf32>
    %28 = vector.shape_cast %27 : vector<1x8x256xf32> to vector<8x256xf32>
    %29 = arith.addf %28, %24 : vector<8x256xf32>
    %c0_15 = arith.constant 0 : index
    %c0_16 = arith.constant 0 : index
    %c0_17 = arith.constant 0 : index
    %30 = vector.load %arg5[%c0_15, %c0_16, %c0_17] : memref<1x8x256xf32, #tpu.memory_space<vmem>>, vector<1x8x256xf32>
    %31 = vector.shape_cast %30 : vector<1x8x256xf32> to vector<8x256xf32>
    %32 = vector.shape_cast %29 : vector<8x256xf32> to vector<1x8x256xf32>
    tpu.vector_store %arg5[%c0_15, %c0_16, %c0_17], %32 {strides = array<i32>} : memref<1x8x256xf32, #tpu.memory_space<vmem>>, vector<1x8x256xf32>,
    %c0_18 = arith.constant 0 : index
    %c0_19 = arith.constant 0 : index
    %c0_20 = arith.constant 0 : index
    %33 = vector.load %arg6[%c0_18, %c0_19, %c0_20] : memref<1x8x256xf32, #tpu.memory_space<vmem>>, vector<1x8x256xf32>
    %34 = vector.shape_cast %33 : vector<1x8x256xf32> to vector<8x256xf32>
    %35 = arith.addf %34, %25 : vector<8x256xf32>
    %c0_21 = arith.constant 0 : index
    %c0_22 = arith.constant 0 : index
    %c0_23 = arith.constant 0 : index
    %36 = vector.load %arg6[%c0_21, %c0_22, %c0_23] : memref<1x8x256xf32, #tpu.memory_space<vmem>>, vector<1x8x256xf32>
    %37 = vector.shape_cast %36 : vector<1x8x256xf32> to vector<8x256xf32>
    %38 = vector.shape_cast %35 : vector<8x256xf32> to vector<1x8x256xf32>
    tpu.vector_store %arg6[%c0_21, %c0_22, %c0_23], %38 {strides = array<i32>} : memref<1x8x256xf32, #tpu.memory_space<vmem>>, vector<1x8x256xf32>,
    %c0_24 = arith.constant 0 : index
    %c0_25 = arith.constant 0 : index
    %c0_26 = arith.constant 0 : index
    %39 = vector.load %arg7[%c0_24, %c0_25, %c0_26] : memref<1x8x256xf32, #tpu.memory_space<vmem>>, vector<1x8x256xf32>
    %40 = vector.shape_cast %39 : vector<1x8x256xf32> to vector<8x256xf32>
    %41 = arith.addf %40, %26 : vector<8x256xf32>
    %c0_27 = arith.constant 0 : index
    %c0_28 = arith.constant 0 : index
    %c0_29 = arith.constant 0 : index
    %42 = vector.load %arg7[%c0_27, %c0_28, %c0_29] : memref<1x8x256xf32, #tpu.memory_space<vmem>>, vector<1x8x256xf32>
    %43 = vector.shape_cast %42 : vector<1x8x256xf32> to vector<8x256xf32>
    %44 = vector.shape_cast %41 : vector<8x256xf32> to vector<1x8x256xf32>
    tpu.vector_store %arg7[%c0_27, %c0_28, %c0_29], %44 {strides = array<i32>} : memref<1x8x256xf32, #tpu.memory_space<vmem>>, vector<1x8x256xf32>,
    return
  }
  func.func @transform_0(%arg0: i32, %arg1: i32) -> (i32, i32) {
    %c1_i32 = arith.constant 1 : i32
    %0 = arith.muli %arg0, %c1_i32 : i32
    %1 = arith.addi %0, %arg1 : i32
    %c0_i32 = arith.constant 0 : i32
    %2 = arith.minsi %1, %c0_i32 : i32
    %c0_i32_0 = arith.constant 0 : i32
    %c0_i32_1 = arith.constant 0 : i32
    return %c0_i32_0, %2 : i32, i32
  }
  func.func @transform_1(%arg0: i32, %arg1: i32) -> (i32, i32) {
    %c1_i32 = arith.constant 1 : i32
    %0 = arith.muli %arg0, %c1_i32 : i32
    %1 = arith.addi %0, %arg1 : i32
    %c0_i32 = arith.constant 0 : i32
    %2 = arith.minsi %1, %c0_i32 : i32
    %c0_i32_0 = arith.constant 0 : i32
    %c0_i32_1 = arith.constant 0 : i32
    return %c0_i32_0, %2 : i32, i32
  }
  func.func @transform_2(%arg0: i32, %arg1: i32) -> (i32, i32) {
    %c1_i32 = arith.constant 1 : i32
    %0 = arith.muli %arg0, %c1_i32 : i32
    %1 = arith.addi %0, %arg1 : i32
    %c0_i32 = arith.constant 0 : i32
    %2 = arith.minsi %1, %c0_i32 : i32
    %c0_i32_0 = arith.constant 0 : i32
    %c0_i32_1 = arith.constant 0 : i32
    return %c0_i32_0, %2 : i32, i32
  }
  func.func @transform_3(%arg0: i32, %arg1: i32) -> (i32, i32, i32) {
    %c0_i32 = arith.constant 0 : i32
    %c0_i32_0 = arith.constant 0 : i32
    %c0_i32_1 = arith.constant 0 : i32
    return %arg0, %c0_i32, %c0_i32_0 : i32, i32, i32
  }
  func.func @transform_4(%arg0: i32, %arg1: i32) -> (i32, i32, i32) {
    %c0_i32 = arith.constant 0 : i32
    %c0_i32_0 = arith.constant 0 : i32
    %c0_i32_1 = arith.constant 0 : i32
    return %arg0, %c0_i32, %c0_i32_0 : i32, i32, i32
  }
  func.func @transform_5(%arg0: i32, %arg1: i32) -> (i32, i32, i32) {
    %c0_i32 = arith.constant 0 : i32
    %c0_i32_0 = arith.constant 0 : i32
    %c0_i32_1 = arith.constant 0 : i32
    return %arg0, %c0_i32, %c0_i32_0 : i32, i32, i32
  }
}

</mosaic_0001>

<bundles_post_ra>
// kernel: ddice.1
= control target key start
LH: loop header
LB: loop body
LE: loop exit
PB: predicated region body
PF: predicated region fallthrough
CT: control target
= control target key end

     0   :  { %s280_s0 = inlined_call_operand.vmem [shape: f32[8,256], index: 0, kind: input, shape index: {}]   ;;  %s281_s1 = inlined_call_operand.vmem [shape: f32[8,256], index: 1, kind: input, shape index: {}]   ;;  %s282_s2 = inlined_call_operand.vmem [shape: f32[8,256], index: 2, kind: input, shape index: {}]   ;;  %s283_s4 = inlined_call_operand.vmem [shape: f32[1,8,256], index: 4, kind: output, shape index: {1}]   ;;  %s284_s5 = inlined_call_operand.vmem [shape: f32[1,8,256], index: 5, kind: output, shape index: {2}]   ;;  %s285_s3 = inlined_call_operand.vmem [shape: f32[1,8,256], index: 3, kind: output, shape index: {0}]  }
   0x1   :  { %v125_v0 = vld [vmem:[%s280_s0] sm:$0xff]  ;;  %v126_v4 = vld [vmem:[%s280_s0 + $0x8] sm:$0xff] }
   0x2   :  { %v137_v1 = vld [vmem:[%s281_s1] sm:$0xff]  ;;  %v127_v2 = vmul.f32 0.5, %v125_v0  ;;  %v138_v5 = vld [vmem:[%s281_s1 + $0x8] sm:$0xff]  ;;  %v128_v6 = vmul.f32 0.5, %v126_v4 }
   0x3   :  { %v139_v3 = vmul.f32 0.5, %v137_v1  ;;  %v140_v7 = vmul.f32 0.5, %v138_v5  ;;  %v123_v12 = vld [vmem:[%s282_s2] sm:$0xff]  ;;  %v124_v18 = vld [vmem:[%s282_s2 + $0x8] sm:$0xff] }
   0x4   :  { %206 = vtanh.f32 %v127_v2 }
   0x5   :  { %208 = vtanh.f32 %v139_v3 }
   0x6   :  { %210 = vtanh.f32 %v128_v6 }
   0x7   :  { %212 = vtanh.f32 %v140_v7 }
  0x11   :  { %v207_v8 = vpop.eup %206 }
  0x12   :  { %v209_v9 = vpop.eup %208  ;;  %v131_v10 = vmul.f32 0.5, %v207_v8 }
  0x13   :  { %v211_v11 = vpop.eup %210  ;;  %v143_v13 = vmul.f32 0.5, %v209_v9 }
  0x14   :  { %v213_v14 = vpop.eup %212  ;;  %v133_v15 = vsub.f32 0.5, %v131_v10  ;;  %v132_v16 = vmul.f32 0.5, %v211_v11 }
  0x15   :  { %v145_v17 = vsub.f32 0.5, %v143_v13  ;;  %v144_v19 = vmul.f32 0.5, %v213_v14 }
  0x16   :  { %v135_v20 = vmul.f32 %v133_v15, %v123_v12  ;;  %v134_v21 = vsub.f32 0.5, %v132_v16 }
  0x17   :  { %v147_v22 = vmul.f32 %v145_v17, %v123_v12  ;;  %v146_v23 = vsub.f32 0.5, %v144_v19 }
  0x18   :  { %v136_v24 = vmul.f32 %v134_v21, %v124_v18  ;;  %167 = vst [vmem:[%s283_s4] sm:$0xff] %v135_v20 }
  0x19   :  { %v149_v25 = vmul.f32 %v147_v22, %v135_v20  ;;  %v148_v26 = vmul.f32 %v146_v23, %v124_v18  ;;  %173 = vst [vmem:[%s284_s5] sm:$0xff] %v147_v22 }
  0x1a   :  { %168 = vst [vmem:[%s283_s4 + $0x8] sm:$0xff] %v136_v24 }
  0x1b   :  { %v150_v27 = vmul.f32 %v148_v26, %v136_v24  ;;  %161 = vst [vmem:[%s285_s3] sm:$0xff] %v149_v25  ;;  %174 = vst [vmem:[%s284_s5 + $0x8] sm:$0xff] %v148_v26 }
  0x1d   :  { %162 = vst [vmem:[%s285_s3 + $0x8] sm:$0xff] %v150_v27 }

</bundles_post_ra>
